<compile_context>
chip_gen: v5e
topology: v5e:2x2
jax: 0.10.0
libtpu: 0.0.40
codegen_flags: <defaults>
</compile_context>

<pallas_src>
import functools

import jax
import jax.numpy as jnp
from jax.experimental import pallas as pl
from jax.experimental.pallas import tpu as pltpu

L_MAX = 3
_NORM_EPS = 1e-12          # torch.nn.functional.normalize default eps
_LANES = 128               # batch rows per lane group (batch lives on lanes)
_CHUNK = 16                # row-groups per inner strip-mine step (2 f32 vregs per live slab)
_TARGET_STEPS = 4          # keep >= this many grid steps when possible (v7x megacore + padding)
_VMEM_BUDGET = 40 << 20    # double-buffered per-step VMEM budget (fits v7x's 64 MiB/TC)


def _out_dim(l_max: int) -> int:
    return sum(3 ** l for l in range(l_max + 1))     # 40 for l_max = 3


def _round_up(a: int, b: int) -> int:
    return ((a + b - 1) // b) * b


def _make_kernel(l_max: int):
    """Kernel body for a given l_max (feature loops fully unrolled, tile strip-mined)."""

    def kernel(x_ref, o_ref):
        # x_ref: (3, tile_r, 128)   o_ref: (out_dim, tile_r, 128); batch rows live on lanes.
        tile_r = x_ref.shape[1]
        nchunks = tile_r // _CHUNK

        def body(ci, carry):
            r0 = pl.multiple_of(ci * _CHUNK, _CHUNK)
            x0 = x_ref[0, pl.ds(r0, _CHUNK), :].astype(jnp.float32)
            x1 = x_ref[1, pl.ds(r0, _CHUNK), :].astype(jnp.float32)
            x2 = x_ref[2, pl.ds(r0, _CHUNK), :].astype(jnp.float32)

            # nn.functional.normalize(x, dim=-1): x / max(||x||, eps).  rsqrt goes to the EUP
            # (free slot); the clamp keeps padded zero rows finite.
            ss = x0 * x0 + x1 * x1 + x2 * x2
            inv = jax.lax.rsqrt(jnp.maximum(ss, _NORM_EPS * _NORM_EPS))
            c = (x0 * inv, x1 * inv, x2 * inv)

            def put(slot, val):
                # unmasked, lane-dense store of one feature slab for this chunk
                o_ref[slot, pl.ds(r0, _CHUNK), :] = val.astype(o_ref.dtype)

            f = 0
            put(f, jnp.ones_like(c[0]))                       # l = 0
            f += 1

            if l_max > 0:                                     # l = 1
                for i in range(3):
                    put(f, c[i])
                    f += 1

            if l_max > 1:
                # unique pairwise products (6 live slabs), reused by l=2 and l=3
                p = {}
                for i in range(3):
                    for j in range(i, 3):
                        p[(i, j)] = c[i] * c[j]

                def P(i, j):
                    return p[(min(i, j), max(i, j))]

                # l = 2:  3/2 * (x_i x_j - delta_ij / 3)
                for i in range(3):
                    for j in range(3):
                        val = 1.5 * P(i, j)
                        if i == j:
                            val = val - 0.5
                        put(f, val)
                        f += 1

            if l_max > 2:
                # l = 3:  5/2 * (x_i x_j x_k - 1/5*(d_jk x_i + d_ki x_j + d_ij x_k))
                # Triple products are formed right before use (VALU has huge slack; the extra
                # recomputed muls are free, keeping the live set small is not).
                for i in range(3):
                    for j in range(3):
                        for k in range(3):
                            val = 2.5 * (P(i, j) * c[k])
                            if j == k:
                                val = val - 0.5 * c[i]
                            if k == i:
                                val = val - 0.5 * c[j]
                            if i == j:
                                val = val - 0.5 * c[k]
                            put(f, val)
                            f += 1
            return carry

        jax.lax.fori_loop(0, nchunks, body, 0)

    return kernel


@functools.partial(jax.jit, static_argnames=("l_max", "tile_r", "row_major", "out_dtype"))
def cartesian_harmonics(x: jax.Array, l_max: int = 3, *, tile_r: int = 256,
                        row_major: bool = False, out_dtype=jnp.float32) -> jax.Array:
    """Pallas-backed equivalent of CartesianHarmonics(l_max).forward(x).

    x: (N, 3) array (any float dtype), arbitrary N.
    Default return: feature-major (out_dim, N) in `out_dtype` — the kernel's lane-dense layout,
    produced with no extra HBM pass (recommended: the downstream contraction over the out_dim=40
    features can consume it directly).  Pass `row_major=True` for the torch-identical (N, out_dim)
    layout (adds one XLA transpose / HBM pass).
    """
    assert l_max <= L_MAX, f"Cartesian harmonics are implemented for l <= L_MAX={L_MAX}."
    n, d = x.shape
    assert d == 3, "input must be a batch of 3-vectors"
    out_dim = _out_dim(l_max)
    if not jnp.issubdtype(x.dtype, jnp.floating):
        x = x.astype(jnp.float32)

    # ---- tile sizing: batch split into 128-lane groups, `eff` groups per grid step ----
    g = max(1, pl.cdiv(n, _LANES))                   # number of 128-row groups
    g_aligned = _round_up(g, _CHUNK)
    bytes_per_group = (3 * jnp.dtype(x.dtype).itemsize
                       + out_dim * jnp.dtype(out_dtype).itemsize) * _LANES
    vmem_cap = max(_CHUNK, (_VMEM_BUDGET // (2 * bytes_per_group)) // _CHUNK * _CHUNK)
    steps_cap = max(_CHUNK, _round_up(pl.cdiv(g_aligned, _TARGET_STEPS), _CHUNK))
    eff = max(_CHUNK, _round_up(min(tile_r, g_aligned), _CHUNK))
    eff = min(eff, steps_cap, vmem_cap)              # >=4 steps when possible; bound padding/VMEM
    g_pad = _round_up(g_aligned, eff)
    n_pad = g_pad * _LANES

    xp = x if n_pad == n else jnp.pad(x, ((0, n_pad - n), (0, 0)))   # zero rows: eps clamp handles
    x_t = xp.T.reshape(3, g_pad, _LANES)             # batch on lanes; jit fuses pad+transpose

    vmem_limit = int(min(max(4 * eff * bytes_per_group, 32 << 20), 56 << 20))
    cost = pl.CostEstimate(
        flops=120 * n_pad,
        transcendentals=n_pad,
        bytes_accessed=(bytes_per_group // _LANES) * n_pad,
    )

    out_fm = pl.pallas_call(
        _make_kernel(l_max),
        out_shape=jax.ShapeDtypeStruct((out_dim, g_pad, _LANES), out_dtype),
        grid_spec=pltpu.PrefetchScalarGridSpec(
            num_scalar_prefetch=0,
            grid=(g_pad // eff,),
            in_specs=[pl.BlockSpec((3, eff, _LANES), lambda i: (0, i, 0))],
            out_specs=pl.BlockSpec((out_dim, eff, _LANES), lambda i: (0, i, 0)),
        ),
        compiler_params=pltpu.CompilerParams(
            dimension_semantics=("parallel",),
            vmem_limit_bytes=vmem_limit,
        ),
        cost_estimate=cost,
    )(x_t)

    out_fm = out_fm.reshape(out_dim, n_pad)
    if n_pad != n:
        out_fm = out_fm[:, :n]
    if row_major:
        # TODO(synk): an in-kernel (N, out_dim) relayout would avoid this extra HBM pass, but it
        # trades it for XLU transposes + 40/128-lane masked stores that can bind on v7x; the
        # transpose is therefore kept outside and the feature-major default avoids it entirely.
        return out_fm.T                              # torch-identical (N, out_dim)
    return out_fm                                    # (out_dim, N): transpose-free fast path


def _reference(x: jax.Array, l_max: int = 3) -> jax.Array:
    """Plain-JAX reference mirroring the PyTorch module (incl. normalize eps clamp)."""
    x = x.astype(jnp.float32)
    norm = jnp.linalg.norm(x, axis=-1, keepdims=True)
    x = x / jnp.maximum(norm, _NORM_EPS)
    n = x.shape[0]
    eye = jnp.eye(3, dtype=x.dtype)
    parts = [jnp.ones((n, 1), dtype=x.dtype)]
    if l_max > 0:
        parts.append(x)
    if l_max > 1:
        xx = jnp.einsum("ai,aj->aij", x, x)
        parts.append((1.5 * (xx - eye[None] / 3.0)).reshape(n, 9))
    if l_max > 2:
        xe = jnp.einsum("ai,jk->aijk", x, eye)
        xe = xe + jnp.transpose(xe, (0, 2, 3, 1)) + jnp.transpose(xe, (0, 3, 1, 2))
        xxx = jnp.einsum("ai,ajk->aijk", x, jnp.einsum("aj,ak->ajk", x, x))
        parts.append((2.5 * (xxx - 0.2 * xe)).reshape(n, 27))
    return jnp.concatenate(parts, axis=-1)


if __name__ == "__main__":
    key = jax.random.PRNGKey(0)
    n = 10                                                   # BATCH_SIZE in the reference module
    x = jax.random.normal(key, (n, 3), dtype=jnp.float32)
    x = x.at[3].set(jnp.zeros((3,), jnp.float32))            # degenerate row: exercises eps clamp

    ref = _reference(x, l_max=3)

    # default path: feature-major (out_dim, N), no extra HBM pass
    out_fm = jax.block_until_ready(cartesian_harmonics(x, l_max=3))
    assert out_fm.shape == (40, n), out_fm.shape
    assert float(jnp.max(jnp.abs(out_fm.T - ref))) < 1e-5

    # torch-layout path: (N, out_dim)
    out_rm = jax.block_until_ready(cartesian_harmonics(x, l_max=3, row_major=True))
    assert out_rm.shape == (n, 40), out_rm.shape
    assert float(jnp.max(jnp.abs(out_rm - ref))) < 1e-5

    # bf16 output path (halves the dominant HBM stream)
    out_bf = jax.block_until_ready(cartesian_harmonics(x, l_max=3, out_dtype=jnp.bfloat16))
    assert out_bf.shape == (40, n) and out_bf.dtype == jnp.bfloat16
    assert float(jnp.max(jnp.abs(out_bf.astype(jnp.float32).T - ref))) < 3e-2

    # multi-grid-step + lower l_max smoke test
    x2 = jax.random.normal(jax.random.PRNGKey(1), (6000, 3), dtype=jnp.float32)
    out2 = jax.block_until_ready(cartesian_harmonics(x2, l_max=2, row_major=True))
    ref2 = _reference(x2, l_max=2)
    assert out2.shape == (6000, 13), out2.shape
    assert float(jnp.max(jnp.abs(out2 - ref2))) < 1e-5

    print("KERNEL_OK")
</pallas_src>

<mosaic_0001>
module attributes {stable_mosaic.version = 11 : i64} {
  func.func @kernel(%arg0: i32, %arg1: memref<3x16x128xf32, #tpu.memory_space<vmem>>, %arg2: memref<40x16x128xf32, #tpu.memory_space<vmem>>) attributes {dimension_semantics = [#tpu.dimension_semantics<parallel>], iteration_bounds = array<i64: 1>, scalar_prefetch = 0 : i64, scratch_operands = 0 : i64, tpu.core_type = #tpu.core_type<tc>, window_params = [{transform_indices = @transform_0, window_bounds = array<i64: 3, 16, 128>}, {transform_indices = @transform_1, window_bounds = array<i64: 40, 16, 128>}]} {
    %c0_i32 = arith.constant 0 : i32
    %c16_i32 = arith.constant 16 : i32
    %0 = arith.muli %c0_i32, %c16_i32 : i32
    %1 = tpu.assume_multiple %0, 16 : i32
    %c0 = arith.constant 0 : index
    %2 = arith.index_cast %1 : i32 to index
    %c0_0 = arith.constant 0 : index
    %3 = vector.load %arg1[%c0, %2, %c0_0] : memref<3x16x128xf32, #tpu.memory_space<vmem>>, vector<1x16x128xf32>
    %4 = vector.shape_cast %3 : vector<1x16x128xf32> to vector<16x128xf32>
    %c1 = arith.constant 1 : index
    %5 = arith.index_cast %1 : i32 to index
    %c0_1 = arith.constant 0 : index
    %6 = vector.load %arg1[%c1, %5, %c0_1] : memref<3x16x128xf32, #tpu.memory_space<vmem>>, vector<1x16x128xf32>
    %7 = vector.shape_cast %6 : vector<1x16x128xf32> to vector<16x128xf32>
    %c2 = arith.constant 2 : index
    %8 = arith.index_cast %1 : i32 to index
    %c0_2 = arith.constant 0 : index
    %9 = vector.load %arg1[%c2, %8, %c0_2] : memref<3x16x128xf32, #tpu.memory_space<vmem>>, vector<1x16x128xf32>
    %10 = vector.shape_cast %9 : vector<1x16x128xf32> to vector<16x128xf32>
    %11 = arith.mulf %4, %4 : vector<16x128xf32>
    %12 = arith.mulf %7, %7 : vector<16x128xf32>
    %13 = arith.addf %11, %12 : vector<16x128xf32>
    %14 = arith.mulf %10, %10 : vector<16x128xf32>
    %15 = arith.addf %13, %14 : vector<16x128xf32>
    %cst = arith.constant 1.000000e-24 : f32
    %16 = vector.broadcast %cst : f32 to vector<16x128xf32>
    %17 = arith.maximumf %15, %16 : vector<16x128xf32>
    %18 = math.rsqrt %17 : vector<16x128xf32>
    %19 = arith.mulf %4, %18 : vector<16x128xf32>
    %20 = arith.mulf %7, %18 : vector<16x128xf32>
    %21 = arith.mulf %10, %18 : vector<16x128xf32>
    %cst_3 = arith.constant 1.000000e+00 : f32
    %22 = vector.broadcast %cst_3 : f32 to vector<16x128xf32>
    %c0_4 = arith.constant 0 : index
    %23 = arith.index_cast %1 : i32 to index
    %c0_5 = arith.constant 0 : index
    %24 = vector.load %arg2[%c0_4, %23, %c0_5] : memref<40x16x128xf32, #tpu.memory_space<vmem>>, vector<1x16x128xf32>
    %25 = vector.shape_cast %24 : vector<1x16x128xf32> to vector<16x128xf32>
    %26 = vector.shape_cast %22 : vector<16x128xf32> to vector<1x16x128xf32>
    tpu.vector_store %arg2[%c0_4, %23, %c0_5], %26 {strides = array<i32>} : memref<40x16x128xf32, #tpu.memory_space<vmem>>, vector<1x16x128xf32>,
    %c1_6 = arith.constant 1 : index
    %27 = arith.index_cast %1 : i32 to index
    %c0_7 = arith.constant 0 : index
    %28 = vector.load %arg2[%c1_6, %27, %c0_7] : memref<40x16x128xf32, #tpu.memory_space<vmem>>, vector<1x16x128xf32>
    %29 = vector.shape_cast %28 : vector<1x16x128xf32> to vector<16x128xf32>
    %30 = vector.shape_cast %19 : vector<16x128xf32> to vector<1x16x128xf32>
    tpu.vector_store %arg2[%c1_6, %27, %c0_7], %30 {strides = array<i32>} : memref<40x16x128xf32, #tpu.memory_space<vmem>>, vector<1x16x128xf32>,
    %c2_8 = arith.constant 2 : index
    %31 = arith.index_cast %1 : i32 to index
    %c0_9 = arith.constant 0 : index
    %32 = vector.load %arg2[%c2_8, %31, %c0_9] : memref<40x16x128xf32, #tpu.memory_space<vmem>>, vector<1x16x128xf32>
    %33 = vector.shape_cast %32 : vector<1x16x128xf32> to vector<16x128xf32>
    %34 = vector.shape_cast %20 : vector<16x128xf32> to vector<1x16x128xf32>
    tpu.vector_store %arg2[%c2_8, %31, %c0_9], %34 {strides = array<i32>} : memref<40x16x128xf32, #tpu.memory_space<vmem>>, vector<1x16x128xf32>,
    %c3 = arith.constant 3 : index
    %35 = arith.index_cast %1 : i32 to index
    %c0_10 = arith.constant 0 : index
    %36 = vector.load %arg2[%c3, %35, %c0_10] : memref<40x16x128xf32, #tpu.memory_space<vmem>>, vector<1x16x128xf32>
    %37 = vector.shape_cast %36 : vector<1x16x128xf32> to vector<16x128xf32>
    %38 = vector.shape_cast %21 : vector<16x128xf32> to vector<1x16x128xf32>
    tpu.vector_store %arg2[%c3, %35, %c0_10], %38 {strides = array<i32>} : memref<40x16x128xf32, #tpu.memory_space<vmem>>, vector<1x16x128xf32>,
    %39 = arith.mulf %19, %19 : vector<16x128xf32>
    %40 = arith.mulf %19, %20 : vector<16x128xf32>
    %41 = arith.mulf %19, %21 : vector<16x128xf32>
    %42 = arith.mulf %20, %20 : vector<16x128xf32>
    %43 = arith.mulf %20, %21 : vector<16x128xf32>
    %44 = arith.mulf %21, %21 : vector<16x128xf32>
    %cst_11 = arith.constant 1.500000e+00 : f32
    %45 = vector.broadcast %cst_11 : f32 to vector<16x128xf32>
    %46 = arith.mulf %45, %39 : vector<16x128xf32>
    %cst_12 = arith.constant 5.000000e-01 : f32
    %47 = vector.broadcast %cst_12 : f32 to vector<16x128xf32>
    %48 = arith.subf %46, %47 : vector<16x128xf32>
    %c4 = arith.constant 4 : index
    %49 = arith.index_cast %1 : i32 to index
    %c0_13 = arith.constant 0 : index
    %50 = vector.load %arg2[%c4, %49, %c0_13] : memref<40x16x128xf32, #tpu.memory_space<vmem>>, vector<1x16x128xf32>
    %51 = vector.shape_cast %50 : vector<1x16x128xf32> to vector<16x128xf32>
    %52 = vector.shape_cast %48 : vector<16x128xf32> to vector<1x16x128xf32>
    tpu.vector_store %arg2[%c4, %49, %c0_13], %52 {strides = array<i32>} : memref<40x16x128xf32, #tpu.memory_space<vmem>>, vector<1x16x128xf32>,
    %cst_14 = arith.constant 1.500000e+00 : f32
    %53 = vector.broadcast %cst_14 : f32 to vector<16x128xf32>
    %54 = arith.mulf %53, %40 : vector<16x128xf32>
    %c5 = arith.constant 5 : index
    %55 = arith.index_cast %1 : i32 to index
    %c0_15 = arith.constant 0 : index
    %56 = vector.load %arg2[%c5, %55, %c0_15] : memref<40x16x128xf32, #tpu.memory_space<vmem>>, vector<1x16x128xf32>
    %57 = vector.shape_cast %56 : vector<1x16x128xf32> to vector<16x128xf32>
    %58 = vector.shape_cast %54 : vector<16x128xf32> to vector<1x16x128xf32>
    tpu.vector_store %arg2[%c5, %55, %c0_15], %58 {strides = array<i32>} : memref<40x16x128xf32, #tpu.memory_space<vmem>>, vector<1x16x128xf32>,
    %cst_16 = arith.constant 1.500000e+00 : f32
    %59 = vector.broadcast %cst_16 : f32 to vector<16x128xf32>
    %60 = arith.mulf %59, %41 : vector<16x128xf32>
    %c6 = arith.constant 6 : index
    %61 = arith.index_cast %1 : i32 to index
    %c0_17 = arith.constant 0 : index
    %62 = vector.load %arg2[%c6, %61, %c0_17] : memref<40x16x128xf32, #tpu.memory_space<vmem>>, vector<1x16x128xf32>
    %63 = vector.shape_cast %62 : vector<1x16x128xf32> to vector<16x128xf32>
    %64 = vector.shape_cast %60 : vector<16x128xf32> to vector<1x16x128xf32>
    tpu.vector_store %arg2[%c6, %61, %c0_17], %64 {strides = array<i32>} : memref<40x16x128xf32, #tpu.memory_space<vmem>>, vector<1x16x128xf32>,
    %cst_18 = arith.constant 1.500000e+00 : f32
    %65 = vector.broadcast %cst_18 : f32 to vector<16x128xf32>
    %66 = arith.mulf %65, %40 : vector<16x128xf32>
    %c7 = arith.constant 7 : index
    %67 = arith.index_cast %1 : i32 to index
    %c0_19 = arith.constant 0 : index
    %68 = vector.load %arg2[%c7, %67, %c0_19] : memref<40x16x128xf32, #tpu.memory_space<vmem>>, vector<1x16x128xf32>
    %69 = vector.shape_cast %68 : vector<1x16x128xf32> to vector<16x128xf32>
    %70 = vector.shape_cast %66 : vector<16x128xf32> to vector<1x16x128xf32>
    tpu.vector_store %arg2[%c7, %67, %c0_19], %70 {strides = array<i32>} : memref<40x16x128xf32, #tpu.memory_space<vmem>>, vector<1x16x128xf32>,
    %cst_20 = arith.constant 1.500000e+00 : f32
    %71 = vector.broadcast %cst_20 : f32 to vector<16x128xf32>
    %72 = arith.mulf %71, %42 : vector<16x128xf32>
    %cst_21 = arith.constant 5.000000e-01 : f32
    %73 = vector.broadcast %cst_21 : f32 to vector<16x128xf32>
    %74 = arith.subf %72, %73 : vector<16x128xf32>
    %c8 = arith.constant 8 : index
    %75 = arith.index_cast %1 : i32 to index
    %c0_22 = arith.constant 0 : index
    %76 = vector.load %arg2[%c8, %75, %c0_22] : memref<40x16x128xf32, #tpu.memory_space<vmem>>, vector<1x16x128xf32>
    %77 = vector.shape_cast %76 : vector<1x16x128xf32> to vector<16x128xf32>
    %78 = vector.shape_cast %74 : vector<16x128xf32> to vector<1x16x128xf32>
    tpu.vector_store %arg2[%c8, %75, %c0_22], %78 {strides = array<i32>} : memref<40x16x128xf32, #tpu.memory_space<vmem>>, vector<1x16x128xf32>,
    %cst_23 = arith.constant 1.500000e+00 : f32
    %79 = vector.broadcast %cst_23 : f32 to vector<16x128xf32>
    %80 = arith.mulf %79, %43 : vector<16x128xf32>
    %c9 = arith.constant 9 : index
    %81 = arith.index_cast %1 : i32 to index
    %c0_24 = arith.constant 0 : index
    %82 = vector.load %arg2[%c9, %81, %c0_24] : memref<40x16x128xf32, #tpu.memory_space<vmem>>, vector<1x16x128xf32>
    %83 = vector.shape_cast %82 : vector<1x16x128xf32> to vector<16x128xf32>
    %84 = vector.shape_cast %80 : vector<16x128xf32> to vector<1x16x128xf32>
    tpu.vector_store %arg2[%c9, %81, %c0_24], %84 {strides = array<i32>} : memref<40x16x128xf32, #tpu.memory_space<vmem>>, vector<1x16x128xf32>,
    %cst_25 = arith.constant 1.500000e+00 : f32
    %85 = vector.broadcast %cst_25 : f32 to vector<16x128xf32>
    %86 = arith.mulf %85, %41 : vector<16x128xf32>
    %c10 = arith.constant 10 : index
    %87 = arith.index_cast %1 : i32 to index
    %c0_26 = arith.constant 0 : index
    %88 = vector.load %arg2[%c10, %87, %c0_26] : memref<40x16x128xf32, #tpu.memory_space<vmem>>, vector<1x16x128xf32>
    %89 = vector.shape_cast %88 : vector<1x16x128xf32> to vector<16x128xf32>
    %90 = vector.shape_cast %86 : vector<16x128xf32> to vector<1x16x128xf32>
    tpu.vector_store %arg2[%c10, %87, %c0_26], %90 {strides = array<i32>} : memref<40x16x128xf32, #tpu.memory_space<vmem>>, vector<1x16x128xf32>,
    %cst_27 = arith.constant 1.500000e+00 : f32
    %91 = vector.broadcast %cst_27 : f32 to vector<16x128xf32>
    %92 = arith.mulf %91, %43 : vector<16x128xf32>
    %c11 = arith.constant 11 : index
    %93 = arith.index_cast %1 : i32 to index
    %c0_28 = arith.constant 0 : index
    %94 = vector.load %arg2[%c11, %93, %c0_28] : memref<40x16x128xf32, #tpu.memory_space<vmem>>, vector<1x16x128xf32>
    %95 = vector.shape_cast %94 : vector<1x16x128xf32> to vector<16x128xf32>
    %96 = vector.shape_cast %92 : vector<16x128xf32> to vector<1x16x128xf32>
    tpu.vector_store %arg2[%c11, %93, %c0_28], %96 {strides = array<i32>} : memref<40x16x128xf32, #tpu.memory_space<vmem>>, vector<1x16x128xf32>,
    %cst_29 = arith.constant 1.500000e+00 : f32
    %97 = vector.broadcast %cst_29 : f32 to vector<16x128xf32>
    %98 = arith.mulf %97, %44 : vector<16x128xf32>
    %cst_30 = arith.constant 5.000000e-01 : f32
    %99 = vector.broadcast %cst_30 : f32 to vector<16x128xf32>
    %100 = arith.subf %98, %99 : vector<16x128xf32>
    %c12 = arith.constant 12 : index
    %101 = arith.index_cast %1 : i32 to index
    %c0_31 = arith.constant 0 : index
    %102 = vector.load %arg2[%c12, %101, %c0_31] : memref<40x16x128xf32, #tpu.memory_space<vmem>>, vector<1x16x128xf32>
    %103 = vector.shape_cast %102 : vector<1x16x128xf32> to vector<16x128xf32>
    %104 = vector.shape_cast %100 : vector<16x128xf32> to vector<1x16x128xf32>
    tpu.vector_store %arg2[%c12, %101, %c0_31], %104 {strides = array<i32>} : memref<40x16x128xf32, #tpu.memory_space<vmem>>, vector<1x16x128xf32>,
    %105 = arith.mulf %39, %19 : vector<16x128xf32>
    %cst_32 = arith.constant 2.500000e+00 : f32
    %106 = vector.broadcast %cst_32 : f32 to vector<16x128xf32>
    %107 = arith.mulf %106, %105 : vector<16x128xf32>
    %cst_33 = arith.constant 5.000000e-01 : f32
    %108 = vector.broadcast %cst_33 : f32 to vector<16x128xf32>
    %109 = arith.mulf %108, %19 : vector<16x128xf32>
    %110 = arith.subf %107, %109 : vector<16x128xf32>
    %cst_34 = arith.constant 5.000000e-01 : f32
    %111 = vector.broadcast %cst_34 : f32 to vector<16x128xf32>
    %112 = arith.mulf %111, %19 : vector<16x128xf32>
    %113 = arith.subf %110, %112 : vector<16x128xf32>
    %cst_35 = arith.constant 5.000000e-01 : f32
    %114 = vector.broadcast %cst_35 : f32 to vector<16x128xf32>
    %115 = arith.mulf %114, %19 : vector<16x128xf32>
    %116 = arith.subf %113, %115 : vector<16x128xf32>
    %c13 = arith.constant 13 : index
    %117 = arith.index_cast %1 : i32 to index
    %c0_36 = arith.constant 0 : index
    %118 = vector.load %arg2[%c13, %117, %c0_36] : memref<40x16x128xf32, #tpu.memory_space<vmem>>, vector<1x16x128xf32>
    %119 = vector.shape_cast %118 : vector<1x16x128xf32> to vector<16x128xf32>
    %120 = vector.shape_cast %116 : vector<16x128xf32> to vector<1x16x128xf32>
    tpu.vector_store %arg2[%c13, %117, %c0_36], %120 {strides = array<i32>} : memref<40x16x128xf32, #tpu.memory_space<vmem>>, vector<1x16x128xf32>,
    %121 = arith.mulf %39, %20 : vector<16x128xf32>
    %cst_37 = arith.constant 2.500000e+00 : f32
    %122 = vector.broadcast %cst_37 : f32 to vector<16x128xf32>
    %123 = arith.mulf %122, %121 : vector<16x128xf32>
    %cst_38 = arith.constant 5.000000e-01 : f32
    %124 = vector.broadcast %cst_38 : f32 to vector<16x128xf32>
    %125 = arith.mulf %124, %20 : vector<16x128xf32>
    %126 = arith.subf %123, %125 : vector<16x128xf32>
    %c14 = arith.constant 14 : index
    %127 = arith.index_cast %1 : i32 to index
    %c0_39 = arith.constant 0 : index
    %128 = vector.load %arg2[%c14, %127, %c0_39] : memref<40x16x128xf32, #tpu.memory_space<vmem>>, vector<1x16x128xf32>
    %129 = vector.shape_cast %128 : vector<1x16x128xf32> to vector<16x128xf32>
    %130 = vector.shape_cast %126 : vector<16x128xf32> to vector<1x16x128xf32>
    tpu.vector_store %arg2[%c14, %127, %c0_39], %130 {strides = array<i32>} : memref<40x16x128xf32, #tpu.memory_space<vmem>>, vector<1x16x128xf32>,
    %131 = arith.mulf %39, %21 : vector<16x128xf32>
    %cst_40 = arith.constant 2.500000e+00 : f32
    %132 = vector.broadcast %cst_40 : f32 to vector<16x128xf32>
    %133 = arith.mulf %132, %131 : vector<16x128xf32>
    %cst_41 = arith.constant 5.000000e-01 : f32
    %134 = vector.broadcast %cst_41 : f32 to vector<16x128xf32>
    %135 = arith.mulf %134, %21 : vector<16x128xf32>
    %136 = arith.subf %133, %135 : vector<16x128xf32>
    %c15 = arith.constant 15 : index
    %137 = arith.index_cast %1 : i32 to index
    %c0_42 = arith.constant 0 : index
    %138 = vector.load %arg2[%c15, %137, %c0_42] : memref<40x16x128xf32, #tpu.memory_space<vmem>>, vector<1x16x128xf32>
    %139 = vector.shape_cast %138 : vector<1x16x128xf32> to vector<16x128xf32>
    %140 = vector.shape_cast %136 : vector<16x128xf32> to vector<1x16x128xf32>
    tpu.vector_store %arg2[%c15, %137, %c0_42], %140 {strides = array<i32>} : memref<40x16x128xf32, #tpu.memory_space<vmem>>, vector<1x16x128xf32>,
    %141 = arith.mulf %40, %19 : vector<16x128xf32>
    %cst_43 = arith.constant 2.500000e+00 : f32
    %142 = vector.broadcast %cst_43 : f32 to vector<16x128xf32>
    %143 = arith.mulf %142, %141 : vector<16x128xf32>
    %cst_44 = arith.constant 5.000000e-01 : f32
    %144 = vector.broadcast %cst_44 : f32 to vector<16x128xf32>
    %145 = arith.mulf %144, %20 : vector<16x128xf32>
    %146 = arith.subf %143, %145 : vector<16x128xf32>
    %c16 = arith.constant 16 : index
    %147 = arith.index_cast %1 : i32 to index
    %c0_45 = arith.constant 0 : index
    %148 = vector.load %arg2[%c16, %147, %c0_45] : memref<40x16x128xf32, #tpu.memory_space<vmem>>, vector<1x16x128xf32>
    %149 = vector.shape_cast %148 : vector<1x16x128xf32> to vector<16x128xf32>
    %150 = vector.shape_cast %146 : vector<16x128xf32> to vector<1x16x128xf32>
    tpu.vector_store %arg2[%c16, %147, %c0_45], %150 {strides = array<i32>} : memref<40x16x128xf32, #tpu.memory_space<vmem>>, vector<1x16x128xf32>,
    %151 = arith.mulf %40, %20 : vector<16x128xf32>
    %cst_46 = arith.constant 2.500000e+00 : f32
    %152 = vector.broadcast %cst_46 : f32 to vector<16x128xf32>
    %153 = arith.mulf %152, %151 : vector<16x128xf32>
    %cst_47 = arith.constant 5.000000e-01 : f32
    %154 = vector.broadcast %cst_47 : f32 to vector<16x128xf32>
    %155 = arith.mulf %154, %19 : vector<16x128xf32>
    %156 = arith.subf %153, %155 : vector<16x128xf32>
    %c17 = arith.constant 17 : index
    %157 = arith.index_cast %1 : i32 to index
    %c0_48 = arith.constant 0 : index
    %158 = vector.load %arg2[%c17, %157, %c0_48] : memref<40x16x128xf32, #tpu.memory_space<vmem>>, vector<1x16x128xf32>
    %159 = vector.shape_cast %158 : vector<1x16x128xf32> to vector<16x128xf32>
    %160 = vector.shape_cast %156 : vector<16x128xf32> to vector<1x16x128xf32>
    tpu.vector_store %arg2[%c17, %157, %c0_48], %160 {strides = array<i32>} : memref<40x16x128xf32, #tpu.memory_space<vmem>>, vector<1x16x128xf32>,
    %161 = arith.mulf %40, %21 : vector<16x128xf32>
    %cst_49 = arith.constant 2.500000e+00 : f32
    %162 = vector.broadcast %cst_49 : f32 to vector<16x128xf32>
    %163 = arith.mulf %162, %161 : vector<16x128xf32>
    %c18 = arith.constant 18 : index
    %164 = arith.index_cast %1 : i32 to index
    %c0_50 = arith.constant 0 : index
    %165 = vector.load %arg2[%c18, %164, %c0_50] : memref<40x16x128xf32, #tpu.memory_space<vmem>>, vector<1x16x128xf32>
    %166 = vector.shape_cast %165 : vector<1x16x128xf32> to vector<16x128xf32>
    %167 = vector.shape_cast %163 : vector<16x128xf32> to vector<1x16x128xf32>
    tpu.vector_store %arg2[%c18, %164, %c0_50], %167 {strides = array<i32>} : memref<40x16x128xf32, #tpu.memory_space<vmem>>, vector<1x16x128xf32>,
    %168 = arith.mulf %41, %19 : vector<16x128xf32>
    %cst_51 = arith.constant 2.500000e+00 : f32
    %169 = vector.broadcast %cst_51 : f32 to vector<16x128xf32>
    %170 = arith.mulf %169, %168 : vector<16x128xf32>
    %cst_52 = arith.constant 5.000000e-01 : f32
    %171 = vector.broadcast %cst_52 : f32 to vector<16x128xf32>
    %172 = arith.mulf %171, %21 : vector<16x128xf32>
    %173 = arith.subf %170, %172 : vector<16x128xf32>
    %c19 = arith.constant 19 : index
    %174 = arith.index_cast %1 : i32 to index
    %c0_53 = arith.constant 0 : index
    %175 = vector.load %arg2[%c19, %174, %c0_53] : memref<40x16x128xf32, #tpu.memory_space<vmem>>, vector<1x16x128xf32>
    %176 = vector.shape_cast %175 : vector<1x16x128xf32> to vector<16x128xf32>
    %177 = vector.shape_cast %173 : vector<16x128xf32> to vector<1x16x128xf32>
    tpu.vector_store %arg2[%c19, %174, %c0_53], %177 {strides = array<i32>} : memref<40x16x128xf32, #tpu.memory_space<vmem>>, vector<1x16x128xf32>,
    %178 = arith.mulf %41, %20 : vector<16x128xf32>
    %cst_54 = arith.constant 2.500000e+00 : f32
    %179 = vector.broadcast %cst_54 : f32 to vector<16x128xf32>
    %180 = arith.mulf %179, %178 : vector<16x128xf32>
    %c20 = arith.constant 20 : index
    %181 = arith.index_cast %1 : i32 to index
    %c0_55 = arith.constant 0 : index
    %182 = vector.load %arg2[%c20, %181, %c0_55] : memref<40x16x128xf32, #tpu.memory_space<vmem>>, vector<1x16x128xf32>
    %183 = vector.shape_cast %182 : vector<1x16x128xf32> to vector<16x128xf32>
    %184 = vector.shape_cast %180 : vector<16x128xf32> to vector<1x16x128xf32>
    tpu.vector_store %arg2[%c20, %181, %c0_55], %184 {strides = array<i32>} : memref<40x16x128xf32, #tpu.memory_space<vmem>>, vector<1x16x128xf32>,
    %185 = arith.mulf %41, %21 : vector<16x128xf32>
    %cst_56 = arith.constant 2.500000e+00 : f32
    %186 = vector.broadcast %cst_56 : f32 to vector<16x128xf32>
    %187 = arith.mulf %186, %185 : vector<16x128xf32>
    %cst_57 = arith.constant 5.000000e-01 : f32
    %188 = vector.broadcast %cst_57 : f32 to vector<16x128xf32>
    %189 = arith.mulf %188, %19 : vector<16x128xf32>
    %190 = arith.subf %187, %189 : vector<16x128xf32>
    %c21 = arith.constant 21 : index
    %191 = arith.index_cast %1 : i32 to index
    %c0_58 = arith.constant 0 : index
    %192 = vector.load %arg2[%c21, %191, %c0_58] : memref<40x16x128xf32, #tpu.memory_space<vmem>>, vector<1x16x128xf32>
    %193 = vector.shape_cast %192 : vector<1x16x128xf32> to vector<16x128xf32>
    %194 = vector.shape_cast %190 : vector<16x128xf32> to vector<1x16x128xf32>
    tpu.vector_store %arg2[%c21, %191, %c0_58], %194 {strides = array<i32>} : memref<40x16x128xf32, #tpu.memory_space<vmem>>, vector<1x16x128xf32>,
    %195 = arith.mulf %40, %19 : vector<16x128xf32>
    %cst_59 = arith.constant 2.500000e+00 : f32
    %196 = vector.broadcast %cst_59 : f32 to vector<16x128xf32>
    %197 = arith.mulf %196, %195 : vector<16x128xf32>
    %cst_60 = arith.constant 5.000000e-01 : f32
    %198 = vector.broadcast %cst_60 : f32 to vector<16x128xf32>
    %199 = arith.mulf %198, %20 : vector<16x128xf32>
    %200 = arith.subf %197, %199 : vector<16x128xf32>
    %c22 = arith.constant 22 : index
    %201 = arith.index_cast %1 : i32 to index
    %c0_61 = arith.constant 0 : index
    %202 = vector.load %arg2[%c22, %201, %c0_61] : memref<40x16x128xf32, #tpu.memory_space<vmem>>, vector<1x16x128xf32>
    %203 = vector.shape_cast %202 : vector<1x16x128xf32> to vector<16x128xf32>
    %204 = vector.shape_cast %200 : vector<16x128xf32> to vector<1x16x128xf32>
    tpu.vector_store %arg2[%c22, %201, %c0_61], %204 {strides = array<i32>} : memref<40x16x128xf32, #tpu.memory_space<vmem>>, vector<1x16x128xf32>,
    %205 = arith.mulf %40, %20 : vector<16x128xf32>
    %cst_62 = arith.constant 2.500000e+00 : f32
    %206 = vector.broadcast %cst_62 : f32 to vector<16x128xf32>
    %207 = arith.mulf %206, %205 : vector<16x128xf32>
    %cst_63 = arith.constant 5.000000e-01 : f32
    %208 = vector.broadcast %cst_63 : f32 to vector<16x128xf32>
    %209 = arith.mulf %208, %19 : vector<16x128xf32>
    %210 = arith.subf %207, %209 : vector<16x128xf32>
    %c23 = arith.constant 23 : index
    %211 = arith.index_cast %1 : i32 to index
    %c0_64 = arith.constant 0 : index
    %212 = vector.load %arg2[%c23, %211, %c0_64] : memref<40x16x128xf32, #tpu.memory_space<vmem>>, vector<1x16x128xf32>
    %213 = vector.shape_cast %212 : vector<1x16x128xf32> to vector<16x128xf32>
    %214 = vector.shape_cast %210 : vector<16x128xf32> to vector<1x16x128xf32>
    tpu.vector_store %arg2[%c23, %211, %c0_64], %214 {strides = array<i32>} : memref<40x16x128xf32, #tpu.memory_space<vmem>>, vector<1x16x128xf32>,
    %215 = arith.mulf %40, %21 : vector<16x128xf32>
    %cst_65 = arith.constant 2.500000e+00 : f32
    %216 = vector.broadcast %cst_65 : f32 to vector<16x128xf32>
    %217 = arith.mulf %216, %215 : vector<16x128xf32>
    %c24 = arith.constant 24 : index
    %218 = arith.index_cast %1 : i32 to index
    %c0_66 = arith.constant 0 : index
    %219 = vector.load %arg2[%c24, %218, %c0_66] : memref<40x16x128xf32, #tpu.memory_space<vmem>>, vector<1x16x128xf32>
    %220 = vector.shape_cast %219 : vector<1x16x128xf32> to vector<16x128xf32>
    %221 = vector.shape_cast %217 : vector<16x128xf32> to vector<1x16x128xf32>
    tpu.vector_store %arg2[%c24, %218, %c0_66], %221 {strides = array<i32>} : memref<40x16x128xf32, #tpu.memory_space<vmem>>, vector<1x16x128xf32>,
    %222 = arith.mulf %42, %19 : vector<16x128xf32>
    %cst_67 = arith.constant 2.500000e+00 : f32
    %223 = vector.broadcast %cst_67 : f32 to vector<16x128xf32>
    %224 = arith.mulf %223, %222 : vector<16x128xf32>
    %cst_68 = arith.constant 5.000000e-01 : f32
    %225 = vector.broadcast %cst_68 : f32 to vector<16x128xf32>
    %226 = arith.mulf %225, %19 : vector<16x128xf32>
    %227 = arith.subf %224, %226 : vector<16x128xf32>
    %c25 = arith.constant 25 : index
    %228 = arith.index_cast %1 : i32 to index
    %c0_69 = arith.constant 0 : index
    %229 = vector.load %arg2[%c25, %228, %c0_69] : memref<40x16x128xf32, #tpu.memory_space<vmem>>, vector<1x16x128xf32>
    %230 = vector.shape_cast %229 : vector<1x16x128xf32> to vector<16x128xf32>
    %231 = vector.shape_cast %227 : vector<16x128xf32> to vector<1x16x128xf32>
    tpu.vector_store %arg2[%c25, %228, %c0_69], %231 {strides = array<i32>} : memref<40x16x128xf32, #tpu.memory_space<vmem>>, vector<1x16x128xf32>,
    %232 = arith.mulf %42, %20 : vector<16x128xf32>
    %cst_70 = arith.constant 2.500000e+00 : f32
    %233 = vector.broadcast %cst_70 : f32 to vector<16x128xf32>
    %234 = arith.mulf %233, %232 : vector<16x128xf32>
    %cst_71 = arith.constant 5.000000e-01 : f32
    %235 = vector.broadcast %cst_71 : f32 to vector<16x128xf32>
    %236 = arith.mulf %235, %20 : vector<16x128xf32>
    %237 = arith.subf %234, %236 : vector<16x128xf32>
    %cst_72 = arith.constant 5.000000e-01 : f32
    %238 = vector.broadcast %cst_72 : f32 to vector<16x128xf32>
    %239 = arith.mulf %238, %20 : vector<16x128xf32>
    %240 = arith.subf %237, %239 : vector<16x128xf32>
    %cst_73 = arith.constant 5.000000e-01 : f32
    %241 = vector.broadcast %cst_73 : f32 to vector<16x128xf32>
    %242 = arith.mulf %241, %20 : vector<16x128xf32>
    %243 = arith.subf %240, %242 : vector<16x128xf32>
    %c26 = arith.constant 26 : index
    %244 = arith.index_cast %1 : i32 to index
    %c0_74 = arith.constant 0 : index
    %245 = vector.load %arg2[%c26, %244, %c0_74] : memref<40x16x128xf32, #tpu.memory_space<vmem>>, vector<1x16x128xf32>
    %246 = vector.shape_cast %245 : vector<1x16x128xf32> to vector<16x128xf32>
    %247 = vector.shape_cast %243 : vector<16x128xf32> to vector<1x16x128xf32>
    tpu.vector_store %arg2[%c26, %244, %c0_74], %247 {strides = array<i32>} : memref<40x16x128xf32, #tpu.memory_space<vmem>>, vector<1x16x128xf32>,
    %248 = arith.mulf %42, %21 : vector<16x128xf32>
    %cst_75 = arith.constant 2.500000e+00 : f32
    %249 = vector.broadcast %cst_75 : f32 to vector<16x128xf32>
    %250 = arith.mulf %249, %248 : vector<16x128xf32>
    %cst_76 = arith.constant 5.000000e-01 : f32
    %251 = vector.broadcast %cst_76 : f32 to vector<16x128xf32>
    %252 = arith.mulf %251, %21 : vector<16x128xf32>
    %253 = arith.subf %250, %252 : vector<16x128xf32>
    %c27 = arith.constant 27 : index
    %254 = arith.index_cast %1 : i32 to index
    %c0_77 = arith.constant 0 : index
    %255 = vector.load %arg2[%c27, %254, %c0_77] : memref<40x16x128xf32, #tpu.memory_space<vmem>>, vector<1x16x128xf32>
    %256 = vector.shape_cast %255 : vector<1x16x128xf32> to vector<16x128xf32>
    %257 = vector.shape_cast %253 : vector<16x128xf32> to vector<1x16x128xf32>
    tpu.vector_store %arg2[%c27, %254, %c0_77], %257 {strides = array<i32>} : memref<40x16x128xf32, #tpu.memory_space<vmem>>, vector<1x16x128xf32>,
    %258 = arith.mulf %43, %19 : vector<16x128xf32>
    %cst_78 = arith.constant 2.500000e+00 : f32
    %259 = vector.broadcast %cst_78 : f32 to vector<16x128xf32>
    %260 = arith.mulf %259, %258 : vector<16x128xf32>
    %c28 = arith.constant 28 : index
    %261 = arith.index_cast %1 : i32 to index
    %c0_79 = arith.constant 0 : index
    %262 = vector.load %arg2[%c28, %261, %c0_79] : memref<40x16x128xf32, #tpu.memory_space<vmem>>, vector<1x16x128xf32>
    %263 = vector.shape_cast %262 : vector<1x16x128xf32> to vector<16x128xf32>
    %264 = vector.shape_cast %260 : vector<16x128xf32> to vector<1x16x128xf32>
    tpu.vector_store %arg2[%c28, %261, %c0_79], %264 {strides = array<i32>} : memref<40x16x128xf32, #tpu.memory_space<vmem>>, vector<1x16x128xf32>,
    %265 = arith.mulf %43, %20 : vector<16x128xf32>
    %cst_80 = arith.constant 2.500000e+00 : f32
    %266 = vector.broadcast %cst_80 : f32 to vector<16x128xf32>
    %267 = arith.mulf %266, %265 : vector<16x128xf32>
    %cst_81 = arith.constant 5.000000e-01 : f32
    %268 = vector.broadcast %cst_81 : f32 to vector<16x128xf32>
    %269 = arith.mulf %268, %21 : vector<16x128xf32>
    %270 = arith.subf %267, %269 : vector<16x128xf32>
    %c29 = arith.constant 29 : index
    %271 = arith.index_cast %1 : i32 to index
    %c0_82 = arith.constant 0 : index
    %272 = vector.load %arg2[%c29, %271, %c0_82] : memref<40x16x128xf32, #tpu.memory_space<vmem>>, vector<1x16x128xf32>
    %273 = vector.shape_cast %272 : vector<1x16x128xf32> to vector<16x128xf32>
    %274 = vector.shape_cast %270 : vector<16x128xf32> to vector<1x16x128xf32>
    tpu.vector_store %arg2[%c29, %271, %c0_82], %274 {strides = array<i32>} : memref<40x16x128xf32, #tpu.memory_space<vmem>>, vector<1x16x128xf32>,
    %275 = arith.mulf %43, %21 : vector<16x128xf32>
    %cst_83 = arith.constant 2.500000e+00 : f32
    %276 = vector.broadcast %cst_83 : f32 to vector<16x128xf32>
    %277 = arith.mulf %276, %275 : vector<16x128xf32>
    %cst_84 = arith.constant 5.000000e-01 : f32
    %278 = vector.broadcast %cst_84 : f32 to vector<16x128xf32>
    %279 = arith.mulf %278, %20 : vector<16x128xf32>
    %280 = arith.subf %277, %279 : vector<16x128xf32>
    %c30 = arith.constant 30 : index
    %281 = arith.index_cast %1 : i32 to index
    %c0_85 = arith.constant 0 : index
    %282 = vector.load %arg2[%c30, %281, %c0_85] : memref<40x16x128xf32, #tpu.memory_space<vmem>>, vector<1x16x128xf32>
    %283 = vector.shape_cast %282 : vector<1x16x128xf32> to vector<16x128xf32>
    %284 = vector.shape_cast %280 : vector<16x128xf32> to vector<1x16x128xf32>
    tpu.vector_store %arg2[%c30, %281, %c0_85], %284 {strides = array<i32>} : memref<40x16x128xf32, #tpu.memory_space<vmem>>, vector<1x16x128xf32>,
    %285 = arith.mulf %41, %19 : vector<16x128xf32>
    %cst_86 = arith.constant 2.500000e+00 : f32
    %286 = vector.broadcast %cst_86 : f32 to vector<16x128xf32>
    %287 = arith.mulf %286, %285 : vector<16x128xf32>
    %cst_87 = arith.constant 5.000000e-01 : f32
    %288 = vector.broadcast %cst_87 : f32 to vector<16x128xf32>
    %289 = arith.mulf %288, %21 : vector<16x128xf32>
    %290 = arith.subf %287, %289 : vector<16x128xf32>
    %c31 = arith.constant 31 : index
    %291 = arith.index_cast %1 : i32 to index
    %c0_88 = arith.constant 0 : index
    %292 = vector.load %arg2[%c31, %291, %c0_88] : memref<40x16x128xf32, #tpu.memory_space<vmem>>, vector<1x16x128xf32>
    %293 = vector.shape_cast %292 : vector<1x16x128xf32> to vector<16x128xf32>
    %294 = vector.shape_cast %290 : vector<16x128xf32> to vector<1x16x128xf32>
    tpu.vector_store %arg2[%c31, %291, %c0_88], %294 {strides = array<i32>} : memref<40x16x128xf32, #tpu.memory_space<vmem>>, vector<1x16x128xf32>,
    %295 = arith.mulf %41, %20 : vector<16x128xf32>
    %cst_89 = arith.constant 2.500000e+00 : f32
    %296 = vector.broadcast %cst_89 : f32 to vector<16x128xf32>
    %297 = arith.mulf %296, %295 : vector<16x128xf32>
    %c32 = arith.constant 32 : index
    %298 = arith.index_cast %1 : i32 to index
    %c0_90 = arith.constant 0 : index
    %299 = vector.load %arg2[%c32, %298, %c0_90] : memref<40x16x128xf32, #tpu.memory_space<vmem>>, vector<1x16x128xf32>
    %300 = vector.shape_cast %299 : vector<1x16x128xf32> to vector<16x128xf32>
    %301 = vector.shape_cast %297 : vector<16x128xf32> to vector<1x16x128xf32>
    tpu.vector_store %arg2[%c32, %298, %c0_90], %301 {strides = array<i32>} : memref<40x16x128xf32, #tpu.memory_space<vmem>>, vector<1x16x128xf32>,
    %302 = arith.mulf %41, %21 : vector<16x128xf32>
    %cst_91 = arith.constant 2.500000e+00 : f32
    %303 = vector.broadcast %cst_91 : f32 to vector<16x128xf32>
    %304 = arith.mulf %303, %302 : vector<16x128xf32>
    %cst_92 = arith.constant 5.000000e-01 : f32
    %305 = vector.broadcast %cst_92 : f32 to vector<16x128xf32>
    %306 = arith.mulf %305, %19 : vector<16x128xf32>
    %307 = arith.subf %304, %306 : vector<16x128xf32>
    %c33 = arith.constant 33 : index
    %308 = arith.index_cast %1 : i32 to index
    %c0_93 = arith.constant 0 : index
    %309 = vector.load %arg2[%c33, %308, %c0_93] : memref<40x16x128xf32, #tpu.memory_space<vmem>>, vector<1x16x128xf32>
    %310 = vector.shape_cast %309 : vector<1x16x128xf32> to vector<16x128xf32>
    %311 = vector.shape_cast %307 : vector<16x128xf32> to vector<1x16x128xf32>
    tpu.vector_store %arg2[%c33, %308, %c0_93], %311 {strides = array<i32>} : memref<40x16x128xf32, #tpu.memory_space<vmem>>, vector<1x16x128xf32>,
    %312 = arith.mulf %43, %19 : vector<16x128xf32>
    %cst_94 = arith.constant 2.500000e+00 : f32
    %313 = vector.broadcast %cst_94 : f32 to vector<16x128xf32>
    %314 = arith.mulf %313, %312 : vector<16x128xf32>
    %c34 = arith.constant 34 : index
    %315 = arith.index_cast %1 : i32 to index
    %c0_95 = arith.constant 0 : index
    %316 = vector.load %arg2[%c34, %315, %c0_95] : memref<40x16x128xf32, #tpu.memory_space<vmem>>, vector<1x16x128xf32>
    %317 = vector.shape_cast %316 : vector<1x16x128xf32> to vector<16x128xf32>
    %318 = vector.shape_cast %314 : vector<16x128xf32> to vector<1x16x128xf32>
    tpu.vector_store %arg2[%c34, %315, %c0_95], %318 {strides = array<i32>} : memref<40x16x128xf32, #tpu.memory_space<vmem>>, vector<1x16x128xf32>,
    %319 = arith.mulf %43, %20 : vector<16x128xf32>
    %cst_96 = arith.constant 2.500000e+00 : f32
    %320 = vector.broadcast %cst_96 : f32 to vector<16x128xf32>
    %321 = arith.mulf %320, %319 : vector<16x128xf32>
    %cst_97 = arith.constant 5.000000e-01 : f32
    %322 = vector.broadcast %cst_97 : f32 to vector<16x128xf32>
    %323 = arith.mulf %322, %21 : vector<16x128xf32>
    %324 = arith.subf %321, %323 : vector<16x128xf32>
    %c35 = arith.constant 35 : index
    %325 = arith.index_cast %1 : i32 to index
    %c0_98 = arith.constant 0 : index
    %326 = vector.load %arg2[%c35, %325, %c0_98] : memref<40x16x128xf32, #tpu.memory_space<vmem>>, vector<1x16x128xf32>
    %327 = vector.shape_cast %326 : vector<1x16x128xf32> to vector<16x128xf32>
    %328 = vector.shape_cast %324 : vector<16x128xf32> to vector<1x16x128xf32>
    tpu.vector_store %arg2[%c35, %325, %c0_98], %328 {strides = array<i32>} : memref<40x16x128xf32, #tpu.memory_space<vmem>>, vector<1x16x128xf32>,
    %329 = arith.mulf %43, %21 : vector<16x128xf32>
    %cst_99 = arith.constant 2.500000e+00 : f32
    %330 = vector.broadcast %cst_99 : f32 to vector<16x128xf32>
    %331 = arith.mulf %330, %329 : vector<16x128xf32>
    %cst_100 = arith.constant 5.000000e-01 : f32
    %332 = vector.broadcast %cst_100 : f32 to vector<16x128xf32>
    %333 = arith.mulf %332, %20 : vector<16x128xf32>
    %334 = arith.subf %331, %333 : vector<16x128xf32>
    %c36 = arith.constant 36 : index
    %335 = arith.index_cast %1 : i32 to index
    %c0_101 = arith.constant 0 : index
    %336 = vector.load %arg2[%c36, %335, %c0_101] : memref<40x16x128xf32, #tpu.memory_space<vmem>>, vector<1x16x128xf32>
    %337 = vector.shape_cast %336 : vector<1x16x128xf32> to vector<16x128xf32>
    %338 = vector.shape_cast %334 : vector<16x128xf32> to vector<1x16x128xf32>
    tpu.vector_store %arg2[%c36, %335, %c0_101], %338 {strides = array<i32>} : memref<40x16x128xf32, #tpu.memory_space<vmem>>, vector<1x16x128xf32>,
    %339 = arith.mulf %44, %19 : vector<16x128xf32>
    %cst_102 = arith.constant 2.500000e+00 : f32
    %340 = vector.broadcast %cst_102 : f32 to vector<16x128xf32>
    %341 = arith.mulf %340, %339 : vector<16x128xf32>
    %cst_103 = arith.constant 5.000000e-01 : f32
    %342 = vector.broadcast %cst_103 : f32 to vector<16x128xf32>
    %343 = arith.mulf %342, %19 : vector<16x128xf32>
    %344 = arith.subf %341, %343 : vector<16x128xf32>
    %c37 = arith.constant 37 : index
    %345 = arith.index_cast %1 : i32 to index
    %c0_104 = arith.constant 0 : index
    %346 = vector.load %arg2[%c37, %345, %c0_104] : memref<40x16x128xf32, #tpu.memory_space<vmem>>, vector<1x16x128xf32>
    %347 = vector.shape_cast %346 : vector<1x16x128xf32> to vector<16x128xf32>
    %348 = vector.shape_cast %344 : vector<16x128xf32> to vector<1x16x128xf32>
    tpu.vector_store %arg2[%c37, %345, %c0_104], %348 {strides = array<i32>} : memref<40x16x128xf32, #tpu.memory_space<vmem>>, vector<1x16x128xf32>,
    %349 = arith.mulf %44, %20 : vector<16x128xf32>
    %cst_105 = arith.constant 2.500000e+00 : f32
    %350 = vector.broadcast %cst_105 : f32 to vector<16x128xf32>
    %351 = arith.mulf %350, %349 : vector<16x128xf32>
    %cst_106 = arith.constant 5.000000e-01 : f32
    %352 = vector.broadcast %cst_106 : f32 to vector<16x128xf32>
    %353 = arith.mulf %352, %20 : vector<16x128xf32>
    %354 = arith.subf %351, %353 : vector<16x128xf32>
    %c38 = arith.constant 38 : index
    %355 = arith.index_cast %1 : i32 to index
    %c0_107 = arith.constant 0 : index
    %356 = vector.load %arg2[%c38, %355, %c0_107] : memref<40x16x128xf32, #tpu.memory_space<vmem>>, vector<1x16x128xf32>
    %357 = vector.shape_cast %356 : vector<1x16x128xf32> to vector<16x128xf32>
    %358 = vector.shape_cast %354 : vector<16x128xf32> to vector<1x16x128xf32>
    tpu.vector_store %arg2[%c38, %355, %c0_107], %358 {strides = array<i32>} : memref<40x16x128xf32, #tpu.memory_space<vmem>>, vector<1x16x128xf32>,
    %359 = arith.mulf %44, %21 : vector<16x128xf32>
    %cst_108 = arith.constant 2.500000e+00 : f32
    %360 = vector.broadcast %cst_108 : f32 to vector<16x128xf32>
    %361 = arith.mulf %360, %359 : vector<16x128xf32>
    %cst_109 = arith.constant 5.000000e-01 : f32
    %362 = vector.broadcast %cst_109 : f32 to vector<16x128xf32>
    %363 = arith.mulf %362, %21 : vector<16x128xf32>
    %364 = arith.subf %361, %363 : vector<16x128xf32>
    %cst_110 = arith.constant 5.000000e-01 : f32
    %365 = vector.broadcast %cst_110 : f32 to vector<16x128xf32>
    %366 = arith.mulf %365, %21 : vector<16x128xf32>
    %367 = arith.subf %364, %366 : vector<16x128xf32>
    %cst_111 = arith.constant 5.000000e-01 : f32
    %368 = vector.broadcast %cst_111 : f32 to vector<16x128xf32>
    %369 = arith.mulf %368, %21 : vector<16x128xf32>
    %370 = arith.subf %367, %369 : vector<16x128xf32>
    %c39 = arith.constant 39 : index
    %371 = arith.index_cast %1 : i32 to index
    %c0_112 = arith.constant 0 : index
    %372 = vector.load %arg2[%c39, %371, %c0_112] : memref<40x16x128xf32, #tpu.memory_space<vmem>>, vector<1x16x128xf32>
    %373 = vector.shape_cast %372 : vector<1x16x128xf32> to vector<16x128xf32>
    %374 = vector.shape_cast %370 : vector<16x128xf32> to vector<1x16x128xf32>
    tpu.vector_store %arg2[%c39, %371, %c0_112], %374 {strides = array<i32>} : memref<40x16x128xf32, #tpu.memory_space<vmem>>, vector<1x16x128xf32>,
    %c1_i32 = arith.constant 1 : i32
    return
  }
  func.func @transform_0(%arg0: i32) -> (i32, i32, i32) {
    %c0_i32 = arith.constant 0 : i32
    %c0_i32_0 = arith.constant 0 : i32
    %c0_i32_1 = arith.constant 0 : i32
    return %c0_i32, %arg0, %c0_i32_0 : i32, i32, i32
  }
  func.func @transform_1(%arg0: i32) -> (i32, i32, i32) {
    %c0_i32 = arith.constant 0 : i32
    %c0_i32_0 = arith.constant 0 : i32
    %c0_i32_1 = arith.constant 0 : i32
    return %c0_i32, %arg0, %c0_i32_0 : i32, i32, i32
  }
}

</mosaic_0001>

<bundles_post_ra>
// kernel: cartesian_harmonics.1
= control target key start
LH: loop header
LB: loop body
LE: loop exit
PB: predicated region body
PF: predicated region fallthrough
CT: control target
= control target key end

     0   :  { %v500_v0 = vmov 1.0   ;;  %s967_s1 = inlined_call_operand.vmem [shape: f32[40,16,128], index: 1, kind: output, shape index: {}]   ;;  %s968_s0 = inlined_call_operand.vmem [shape: f32[3,16,128], index: 0, kind: input, shape index: {}]  }
   0x1   :  { %56 = vst [vmem:[%s967_s1] sm:$0xff] %v500_v0  ;;  %v8_v1 = vld [vmem:[%s968_s0] sm:$0xff]  ;;  %v407_v2 = vld [vmem:[%s968_s0 + $0x10] sm:$0xff]  ;;  %v9_v7 = vld [vmem:[%s968_s0 + $0x8] sm:$0xff] }
   0x2   :  { %v409_v3 = vld [vmem:[%s968_s0 + $0x20] sm:$0xff]  ;;  %57 = vst [vmem:[%s967_s1 + $0x8] sm:$0xff] %v500_v0  ;;  %v18_v4 = vmul.f32 %v8_v1, %v8_v1  ;;  %v20_v5 = vmul.f32 %v407_v2, %v407_v2  ;;  %v408_v8 = vld [vmem:[%s968_s0 + $0x18] sm:$0xff]  ;;  %v410_v9 = vld [vmem:[%s968_s0 + $0x28] sm:$0xff]  ;;  %v19_v10 = vmul.f32 %v9_v7, %v9_v7 }
   0x3   :  { %v24_v6 = vmul.f32 %v409_v3, %v409_v3  ;;  %v21_v11 = vmul.f32 %v408_v8, %v408_v8  ;;  %v25_v12 = vmul.f32 %v410_v9, %v410_v9 }
   0x4   :  { %v22_v13 = vadd.f32 %v20_v5, %v18_v4 }
   0x5   :  { %v23_v14 = vadd.f32 %v21_v11, %v19_v10 }
   0x6   :  { %v26_v15 = vadd.f32 %v24_v6, %v22_v13 }
   0x7   :  { %v27_v16 = vadd.f32 %v25_v12, %v23_v14 }
   0x8   :  { %v28_v17 = vmax.f32 %v26_v15, 1e-24 }
   0x9   :  { %v29_v18 = vmax.f32 %v27_v16, 1e-24 }
   0xa   :  { %496 = vrsqrt.f32 %v28_v17  ;;  %vm36_vm0 = vweird.f32 %v28_v17 }
   0xb   :  { %498 = vrsqrt.f32 %v29_v18  ;;  %vm46_vm2 = vweird.f32 %v29_v18 }
  0x10   :  { %v497_v19 = vpop.eup %496 }
  0x11   :  { %v499_v20 = vpop.eup %498  ;;  %v31_v21 = vmul.f32 %v497_v19, %v28_v17  ;;  %vm37_vm1 = vweird.f32 %v497_v19 }
  0x12   :  { %v41_v22 = vmul.f32 %v499_v20, %v29_v18  ;;  %vm47_vm3 = vweird.f32 %v499_v20  ;;  %vm38_vm4 = vmor %vm36_vm0, %vm37_vm1 }
  0x13   :  { %v32_v23 = vmul.f32 %v497_v19, %v31_v21  ;;  %vm48_vm5 = vmor %vm46_vm2, %vm47_vm3 }
  0x14   :  { %v42_v24 = vmul.f32 %v499_v20, %v41_v22 }
  0x15   :  { %v33_v25 = vmul.f32 0.5, %v32_v23 }
  0x16   :  { %v43_v26 = vmul.f32 0.5, %v42_v24 }
  0x17   :  { %v34_v27 = vsub.f32 1.5, %v33_v25 }
  0x18   :  { %v44_v28 = vsub.f32 1.5, %v43_v26 }
  0x19   :  { %v35_v29 = vmul.f32 %v497_v19, %v34_v27 }
  0x1a   :  { %v45_v30 = vmul.f32 %v499_v20, %v44_v28 }
  0x1b   :  { %v39_v31 = vsel %vm38_vm4, %v497_v19, %v35_v29 }
  0x1c   :  { %v535_v32 = vmul.f32 %v39_v31, %v8_v1  ;;  %v49_v33 = vsel %vm48_vm5, %v499_v20, %v45_v30  ;;  %v543_v35 = vmul.f32 %v407_v2, %v39_v31  ;;  %v559_v39 = vmul.f32 %v409_v3, %v39_v31 }
  0x1d   :  { %v537_v34 = vmul.f32 %v49_v33, %v9_v7  ;;  %v551_v37 = vmul.f32 %v408_v8, %v49_v33  ;;  %v569_v42 = vmul.f32 %v410_v9, %v49_v33 }
  0x1e   :  { %411 = vst [vmem:[%s967_s1 + $0x10] sm:$0xff] %v535_v32  ;;  %v68_v36 = vmul.f32 %v535_v32, %v535_v32  ;;  %v563_v41 = vmul.f32 %v543_v35, %v535_v32  ;;  %v590_v49 = vmul.f32 %v559_v39, %v535_v32  ;;  %v594_v50 = vmul.f32 %v543_v35, %v543_v35 }
  0x1f   :  { %412 = vst [vmem:[%s967_s1 + $0x18] sm:$0xff] %v537_v34  ;;  %v69_v38 = vmul.f32 %v537_v34, %v537_v34  ;;  %v578_v46 = vmul.f32 %v551_v37, %v537_v34  ;;  %v602_v52 = vmul.f32 %v569_v42, %v537_v34  ;;  %v606_v53 = vmul.f32 %v551_v37, %v551_v37 }
  0x20   :  { %413 = vst [vmem:[%s967_s1 + $0x20] sm:$0xff] %v543_v35  ;;  %v80_v40 = vmul.f32 1.5, %v68_v36  ;;  %v88_v45 = vmul.f32 1.5, %v563_v41  ;;  %v134_v51 = vmul.f32 %v68_v36, %v535_v32  ;;  %v94_v55 = vmul.f32 1.5, %v590_v49 }
  0x21   :  { %414 = vst [vmem:[%s967_s1 + $0x28] sm:$0xff] %v551_v37  ;;  %v81_v43 = vmul.f32 1.5, %v69_v38  ;;  %v89_v48 = vmul.f32 1.5, %v578_v46  ;;  %v135_v54 = vmul.f32 %v69_v38, %v537_v34  ;;  %v104_v56 = vmul.f32 1.5, %v594_v50 }
  0x22   :  { %415 = vst [vmem:[%s967_s1 + $0x30] sm:$0xff] %v559_v39  ;;  %v417_v44 = vadd.f32 -0.5, %v80_v40  ;;  %v136_v57 = vmul.f32 2.5, %v134_v51  ;;  %v615_v58 = vmul.f32 0.5, %v535_v32  ;;  %v105_v59 = vmul.f32 1.5, %v606_v53 }
  0x23   :  { %416 = vst [vmem:[%s967_s1 + $0x38] sm:$0xff] %v569_v42  ;;  %v418_v47 = vadd.f32 -0.5, %v81_v43  ;;  %v137_v60 = vmul.f32 2.5, %v135_v54  ;;  %v622_v61 = vmul.f32 0.5, %v537_v34  ;;  %v95_v62 = vmul.f32 1.5, %v602_v52 }
  0x24   :  { %419 = vst [vmem:[%s967_s1 + $0x40] sm:$0xff] %v417_v44  ;;  %v427_v63 = vadd.f32 -0.5, %v104_v56  ;;  %v636_v0 = vmul.f32 %v559_v39, %v543_v35  ;;  %v640_v1 = vmul.f32 %v559_v39, %v559_v39  ;;  %v140_v2 = vsub.f32 %v136_v57, %v615_v58 }
  0x25   :  { %420 = vst [vmem:[%s967_s1 + $0x48] sm:$0xff] %v418_v47  ;;  %v428_v3 = vadd.f32 -0.5, %v105_v59  ;;  %v648_v4 = vmul.f32 %v569_v42, %v569_v42  ;;  %v141_v5 = vsub.f32 %v137_v60, %v622_v61  ;;  %v657_v7 = vmul.f32 %v569_v42, %v551_v37 }
  0x26   :  { %421 = vst [vmem:[%s967_s1 + $0x50] sm:$0xff] %v88_v45  ;;  %v112_v6 = vmul.f32 1.5, %v636_v0  ;;  %v126_v8 = vmul.f32 1.5, %v640_v1  ;;  %v150_v9 = vmul.f32 %v68_v36, %v543_v35  ;;  %v151_v11 = vmul.f32 %v69_v38, %v551_v37 }
  0x27   :  { %425 = vst [vmem:[%s967_s1 + $0x70] sm:$0xff] %v88_v45  ;;  %v127_v10 = vmul.f32 1.5, %v648_v4  ;;  %v113_v12 = vmul.f32 1.5, %v657_v7  ;;  %v142_v13 = vsub.f32 %v140_v2, %v615_v58  ;;  %v162_v14 = vmul.f32 %v68_v36, %v559_v39 }
  0x28   :  { %422 = vst [vmem:[%s967_s1 + $0x58] sm:$0xff] %v89_v48  ;;  %v143_v15 = vsub.f32 %v141_v5, %v622_v61  ;;  %v163_v16 = vmul.f32 %v69_v38, %v569_v42  ;;  %v437_v17 = vadd.f32 -0.5, %v126_v8  ;;  %v152_v18 = vmul.f32 2.5, %v150_v9 }
  0x29   :  { %426 = vst [vmem:[%s967_s1 + $0x78] sm:$0xff] %v89_v48  ;;  %v174_v19 = vmul.f32 %v563_v41, %v535_v32  ;;  %v438_v20 = vadd.f32 -0.5, %v127_v10  ;;  %v153_v21 = vmul.f32 2.5, %v151_v11  ;;  %v144_v22 = vsub.f32 %v142_v13, %v615_v58 }
  0x2a   :  { %423 = vst [vmem:[%s967_s1 + $0x60] sm:$0xff] %v94_v55  ;;  %v690_v23 = vmul.f32 0.5, %v543_v35  ;;  %v164_v24 = vmul.f32 2.5, %v162_v14  ;;  %v175_v25 = vmul.f32 %v578_v46, %v537_v34  ;;  %v145_v26 = vsub.f32 %v143_v15, %v622_v61 }
  0x2b   :  { %433 = vst [vmem:[%s967_s1 + $0xa0] sm:$0xff] %v94_v55  ;;  %v699_v27 = vmul.f32 0.5, %v551_v37  ;;  %v165_v28 = vmul.f32 2.5, %v163_v16  ;;  %v706_v30 = vmul.f32 0.5, %v559_v39  ;;  %v176_v31 = vmul.f32 2.5, %v174_v19 }
  0x2c   :  { %424 = vst [vmem:[%s967_s1 + $0x68] sm:$0xff] %v95_v62  ;;  %v156_v29 = vsub.f32 %v152_v18, %v690_v23  ;;  %v184_v33 = vmul.f32 %v563_v41, %v543_v35  ;;  %v715_v38 = vmul.f32 0.5, %v569_v42  ;;  %v177_v43 = vmul.f32 2.5, %v175_v25 }
  0x2d   :  { %434 = vst [vmem:[%s967_s1 + $0xa8] sm:$0xff] %v95_v62  ;;  %v157_v36 = vsub.f32 %v153_v21, %v699_v27  ;;  %v168_v40 = vsub.f32 %v164_v24, %v706_v30  ;;  %v185_v44 = vmul.f32 %v578_v46, %v551_v37  ;;  %v178_v47 = vsub.f32 %v176_v31, %v690_v23 }
  0x2e   :  { %429 = vst [vmem:[%s967_s1 + $0x80] sm:$0xff] %v427_v63  ;;  %v169_v45 = vsub.f32 %v165_v28, %v715_v38  ;;  %v186_v48 = vmul.f32 2.5, %v184_v33  ;;  %v179_v51 = vsub.f32 %v177_v43, %v699_v27  ;;  %v194_v56 = vmul.f32 %v563_v41, %v559_v39 }
  0x2f   :  { %430 = vst [vmem:[%s967_s1 + $0x88] sm:$0xff] %v428_v3  ;;  %v187_v54 = vmul.f32 2.5, %v185_v44  ;;  %v202_v57 = vmul.f32 %v590_v49, %v535_v32  ;;  %v195_v60 = vmul.f32 %v578_v46, %v569_v42  ;;  %v203_v62 = vmul.f32 %v602_v52, %v537_v34 }
  0x30   :  { %431 = vst [vmem:[%s967_s1 + $0x90] sm:$0xff] %v112_v6  ;;  %v188_v55 = vsub.f32 %v186_v48, %v615_v58  ;;  %v196_v41 = vmul.f32 2.5, %v194_v56  ;;  %v252_v3 = vmul.f32 %v594_v50, %v543_v35  ;;  %v253_v5 = vmul.f32 %v606_v53, %v551_v37 }
  0x31   :  { %435 = vst [vmem:[%s967_s1 + $0xb0] sm:$0xff] %v112_v6  ;;  %v189_v59 = vsub.f32 %v187_v54, %v622_v61  ;;  %v204_v63 = vmul.f32 2.5, %v202_v57  ;;  %v197_v46 = vmul.f32 2.5, %v195_v60  ;;  %v205_v2 = vmul.f32 2.5, %v203_v62 }
  0x32   :  { %432 = vst [vmem:[%s967_s1 + $0x98] sm:$0xff] %v113_v12  ;;  %v212_v8 = vmul.f32 %v590_v49, %v543_v35  ;;  %v220_v9 = vmul.f32 %v590_v49, %v559_v39  ;;  %v213_v11 = vmul.f32 %v602_v52, %v551_v37  ;;  %v254_v13 = vmul.f32 2.5, %v252_v3 }
  0x33   :  { %436 = vst [vmem:[%s967_s1 + $0xb8] sm:$0xff] %v113_v12  ;;  %v206_v6 = vsub.f32 %v204_v63, %v706_v30  ;;  %v207_v10 = vsub.f32 %v205_v2, %v715_v38  ;;  %v221_v12 = vmul.f32 %v602_v52, %v569_v42  ;;  %v255_v49 = vmul.f32 2.5, %v253_v5 }
  0x34   :  { %439 = vst [vmem:[%s967_s1 + $0xc0] sm:$0xff] %v437_v17  ;;  %v214_v14 = vmul.f32 2.5, %v212_v8  ;;  %v222_v15 = vmul.f32 2.5, %v220_v9  ;;  %v242_v16 = vmul.f32 %v594_v50, %v535_v32  ;;  %v243_v52 = vmul.f32 %v606_v53, %v537_v34 }
  0x35   :  { %440 = vst [vmem:[%s967_s1 + $0xc8] sm:$0xff] %v438_v20  ;;  %v215_v17 = vmul.f32 2.5, %v213_v11  ;;  %v223_v18 = vmul.f32 2.5, %v221_v12  ;;  %v256_v19 = vsub.f32 %v254_v13, %v690_v23  ;;  %v257_v20 = vsub.f32 %v255_v49, %v699_v27 }
  0x36   :  { %441 = vst [vmem:[%s967_s1 + $0xd0] sm:$0xff] %v144_v22  ;;  %v224_v21 = vsub.f32 %v222_v15, %v615_v58  ;;  %v244_v22 = vmul.f32 2.5, %v242_v16  ;;  %v266_v24 = vmul.f32 %v594_v50, %v559_v39  ;;  %v245_v25 = vmul.f32 2.5, %v243_v52 }
  0x37   :  { %442 = vst [vmem:[%s967_s1 + $0xd8] sm:$0xff] %v145_v26  ;;  %v267_v26 = vmul.f32 %v606_v53, %v569_v42  ;;  %v225_v28 = vsub.f32 %v223_v18, %v622_v61  ;;  %v259_v50 = vsub.f32 %v257_v20, %v699_v27  ;;  %v276_v43 = vmul.f32 %v636_v0, %v535_v32 }
  0x38   :  { %443 = vst [vmem:[%s967_s1 + $0xe0] sm:$0xff] %v156_v29  ;;  %v258_v29 = vsub.f32 %v256_v19, %v690_v23  ;;  %v246_v53 = vsub.f32 %v244_v22, %v615_v58  ;;  %v268_v31 = vmul.f32 2.5, %v266_v24  ;;  %v247_v33 = vsub.f32 %v245_v25, %v622_v61 }
  0x39   :  { %444 = vst [vmem:[%s967_s1 + $0xe8] sm:$0xff] %v157_v36  ;;  %v269_v36 = vmul.f32 2.5, %v267_v26  ;;  %v284_v44 = vmul.f32 %v636_v0, %v543_v35  ;;  %v277_v48 = vmul.f32 %v657_v7, %v537_v34  ;;  %v294_v57 = vmul.f32 %v636_v0, %v559_v39 }
  0x3a   :  { %445 = vst [vmem:[%s967_s1 + $0xf0] sm:$0xff] %v168_v40  ;;  %v260_v40 = vsub.f32 %v258_v29, %v690_v23  ;;  %v349_v60 = vmul.f32 %v648_v4, %v569_v42  ;;  %v295_v63 = vmul.f32 %v657_v7, %v569_v42  ;;  %v329_v42 = vmul.f32 %v648_v4, %v537_v34 }
  0x3b   :  { %446 = vst [vmem:[%s967_s1 + $0xf8] sm:$0xff] %v169_v45  ;;  %v261_v45 = vsub.f32 %v259_v50, %v699_v27  ;;  %v271_v54 = vsub.f32 %v269_v36, %v715_v38  ;;  %v286_v56 = vmul.f32 2.5, %v284_v44  ;;  %v279_v62 = vmul.f32 2.5, %v277_v48 }
  0x3c   :  { %447 = vst [vmem:[%s967_s1 + $0x100] sm:$0xff] %v178_v47  ;;  %v296_v0 = vmul.f32 2.5, %v294_v57  ;;  %v297_v5 = vmul.f32 2.5, %v295_v63 }
  0x3d   :  { %459 = vst [vmem:[%s967_s1 + $0x160] sm:$0xff] %v178_v47  ;;  %v270_v47 = vsub.f32 %v268_v31, %v706_v30 }
  0x3e   :  { %448 = vst [vmem:[%s967_s1 + $0x108] sm:$0xff] %v179_v51  ;;  %v298_v34 = vsub.f32 %v296_v0, %v690_v23 }
  0x3f   :  { %460 = vst [vmem:[%s967_s1 + $0x168] sm:$0xff] %v179_v51  ;;  %v285_v51 = vmul.f32 %v657_v7, %v551_v37  ;;  %v351_v7 = vmul.f32 2.5, %v349_v60 }
  0x40   :  { %449 = vst [vmem:[%s967_s1 + $0x110] sm:$0xff] %v188_v55 }
  0x41   :  { %461 = vst [vmem:[%s967_s1 + $0x170] sm:$0xff] %v188_v55  ;;  %v278_v55 = vmul.f32 2.5, %v276_v43 }
  0x42   :  { %450 = vst [vmem:[%s967_s1 + $0x118] sm:$0xff] %v189_v59 }
  0x43   :  { %462 = vst [vmem:[%s967_s1 + $0x178] sm:$0xff] %v189_v59  ;;  %v348_v59 = vmul.f32 %v640_v1, %v559_v39  ;;  %v288_v39 = vsub.f32 %v286_v56, %v706_v30 }
  0x44   :  { %451 = vst [vmem:[%s967_s1 + $0x120] sm:$0xff] %v196_v41 }
  0x45   :  { %463 = vst [vmem:[%s967_s1 + $0x180] sm:$0xff] %v196_v41  ;;  %v287_v41 = vmul.f32 2.5, %v285_v51  ;;  %v350_v2 = vmul.f32 2.5, %v348_v59 }
  0x46   :  { %452 = vst [vmem:[%s967_s1 + $0x128] sm:$0xff] %v197_v46 }
  0x47   :  { %464 = vst [vmem:[%s967_s1 + $0x188] sm:$0xff] %v197_v46  ;;  %v328_v46 = vmul.f32 %v640_v1, %v535_v32  ;;  %v289_v3 = vsub.f32 %v287_v41, %v715_v38  ;;  %v339_v32 = vmul.f32 %v648_v4, %v551_v37  ;;  %v352_v9 = vsub.f32 %v350_v2, %v706_v30 }
  0x48   :  { %453 = vst [vmem:[%s967_s1 + $0x130] sm:$0xff] %v206_v6  ;;  %v299_v37 = vsub.f32 %v297_v5, %v699_v27 }
  0x49   :  { %477 = vst [vmem:[%s967_s1 + $0x1f0] sm:$0xff] %v206_v6  ;;  %v338_v6 = vmul.f32 %v640_v1, %v543_v35  ;;  %v330_v8 = vmul.f32 2.5, %v328_v46  ;;  %v331_v35 = vmul.f32 2.5, %v329_v42  ;;  %v353_v1 = vsub.f32 %v351_v7, %v715_v38 }
  0x4a   :  { %454 = vst [vmem:[%s967_s1 + $0x138] sm:$0xff] %v207_v10  ;;  %v354_v12 = vsub.f32 %v352_v9, %v706_v30 }
  0x4b   :  { %478 = vst [vmem:[%s967_s1 + $0x1f8] sm:$0xff] %v207_v10  ;;  %v340_v4 = vmul.f32 2.5, %v338_v6  ;;  %v341_v10 = vmul.f32 2.5, %v339_v32  ;;  %v332_v11 = vsub.f32 %v330_v8, %v615_v58  ;;  %v333_v13 = vsub.f32 %v331_v35, %v622_v61 }
  0x4c   :  { %455 = vst [vmem:[%s967_s1 + $0x140] sm:$0xff] %v214_v14  ;;  %v355_v49 = vsub.f32 %v353_v1, %v715_v38  ;;  %v356_v61 = vsub.f32 %v354_v12, %v706_v30 }
  0x4d   :  { %479 = vst [vmem:[%s967_s1 + $0x200] sm:$0xff] %v214_v14  ;;  %v342_v14 = vsub.f32 %v340_v4, %v690_v23  ;;  %v343_v58 = vsub.f32 %v341_v10, %v699_v27 }
  0x4e   :  { %456 = vst [vmem:[%s967_s1 + $0x148] sm:$0xff] %v215_v17  ;;  %v357_v15 = vsub.f32 %v355_v49, %v715_v38 }
  0x4f   :  { %480 = vst [vmem:[%s967_s1 + $0x208] sm:$0xff] %v215_v17 }
  0x50   :  { %457 = vst [vmem:[%s967_s1 + $0x150] sm:$0xff] %v224_v21 }
  0x51   :  { %481 = vst [vmem:[%s967_s1 + $0x210] sm:$0xff] %v224_v21 }
  0x52   :  { %458 = vst [vmem:[%s967_s1 + $0x158] sm:$0xff] %v225_v28 }
  0x53   :  { %482 = vst [vmem:[%s967_s1 + $0x218] sm:$0xff] %v225_v28 }
  0x54   :  { %465 = vst [vmem:[%s967_s1 + $0x190] sm:$0xff] %v246_v53 }
  0x55   :  { %466 = vst [vmem:[%s967_s1 + $0x198] sm:$0xff] %v247_v33 }
  0x56   :  { %467 = vst [vmem:[%s967_s1 + $0x1a0] sm:$0xff] %v260_v40 }
  0x57   :  { %468 = vst [vmem:[%s967_s1 + $0x1a8] sm:$0xff] %v261_v45 }
  0x58   :  { %469 = vst [vmem:[%s967_s1 + $0x1b0] sm:$0xff] %v270_v47 }
  0x59   :  { %470 = vst [vmem:[%s967_s1 + $0x1b8] sm:$0xff] %v271_v54 }
  0x5a   :  { %471 = vst [vmem:[%s967_s1 + $0x1c0] sm:$0xff] %v278_v55 }
  0x5b   :  { %483 = vst [vmem:[%s967_s1 + $0x220] sm:$0xff] %v278_v55 }
  0x5c   :  { %472 = vst [vmem:[%s967_s1 + $0x1c8] sm:$0xff] %v279_v62 }
  0x5d   :  { %484 = vst [vmem:[%s967_s1 + $0x228] sm:$0xff] %v279_v62 }
  0x5e   :  { %473 = vst [vmem:[%s967_s1 + $0x1d0] sm:$0xff] %v288_v39 }
  0x5f   :  { %485 = vst [vmem:[%s967_s1 + $0x230] sm:$0xff] %v288_v39 }
  0x60   :  { %474 = vst [vmem:[%s967_s1 + $0x1d8] sm:$0xff] %v289_v3 }
  0x61   :  { %486 = vst [vmem:[%s967_s1 + $0x238] sm:$0xff] %v289_v3 }
  0x62   :  { %475 = vst [vmem:[%s967_s1 + $0x1e0] sm:$0xff] %v298_v34 }
  0x63   :  { %487 = vst [vmem:[%s967_s1 + $0x240] sm:$0xff] %v298_v34 }
  0x64   :  { %476 = vst [vmem:[%s967_s1 + $0x1e8] sm:$0xff] %v299_v37 }
  0x65   :  { %488 = vst [vmem:[%s967_s1 + $0x248] sm:$0xff] %v299_v37 }
  0x66   :  { %489 = vst [vmem:[%s967_s1 + $0x250] sm:$0xff] %v332_v11 }
  0x67   :  { %490 = vst [vmem:[%s967_s1 + $0x258] sm:$0xff] %v333_v13 }
  0x68   :  { %491 = vst [vmem:[%s967_s1 + $0x260] sm:$0xff] %v342_v14 }
  0x69   :  { %492 = vst [vmem:[%s967_s1 + $0x268] sm:$0xff] %v343_v58 }
  0x6a   :  { %493 = vst [vmem:[%s967_s1 + $0x270] sm:$0xff] %v356_v61 }
  0x6b   :  { %494 = vst [vmem:[%s967_s1 + $0x278] sm:$0xff] %v357_v15 }

</bundles_post_ra>
